<compile_context>
chip_gen: v6e
topology: v6e:2x2x1
jax: 0.10.0
libtpu: 0.0.40
codegen_flags: <defaults>
</compile_context>

<pallas_src>
import math
from functools import partial

import jax
import jax.numpy as jnp
from jax.experimental import pallas as pl
from jax.experimental.pallas import tpu as pltpu

BN_EPS = 1e-5


def _round_up(x, m):
    return (x + m - 1) // m * m


def _fused_deconv_bn_kernel(wt_ref, at_ref, g_ref, b_ref, o_ref, *, inv_m, eps):
    """y^T = W^T @ A^T (MXU, f32 acc) + batch-norm stats + affine fold + FMA, all in VMEM."""
    y = jnp.dot(wt_ref[...], at_ref[...], preferred_element_type=jnp.float32)  # (Cpad, Mpad) f32
    # Per-channel batch statistics: lane (M) reductions.  Zero-padded rows/cols of W^T / A^T
    # contribute zeros, so dividing by the *real* M keeps the statistics exact.
    csum = jnp.sum(y, axis=1, keepdims=True)                # (Cpad, 1)
    cssq = jnp.sum(y * y, axis=1, keepdims=True)            # (Cpad, 1)
    mean = csum * inv_m
    var = jnp.maximum(cssq * inv_m - mean * mean, 0.0)      # biased var, like torch BN (train)
    scale = g_ref[...] * jax.lax.rsqrt(var + eps)
    bias = b_ref[...] - mean * scale
    o_ref[...] = y * scale + bias


def _im2col_transposed_conv(x_nchw, weight, *, stride, pad, dilation):
    """ConvTranspose2d ('same': out = in*stride) -> stride-1 conv im2col, transposed layout.

    Returns A^T (Kdim, M) bf16, W^T (Cout, Kdim) bf16 and the output geometry.
    """
    N, Cin, H, W = x_nchw.shape
    Cin_w, Cout, K, Kw = weight.shape
    assert K == Kw and Cin_w == Cin
    s, p, d = stride, pad, dilation

    Ho, Wo = H * s, W * s                         # "Same" transposed-conv output size
    out_pad = Ho - ((H - 1) * s - 2 * p + d * (K - 1) + 1)
    assert out_pad >= 0
    p_eff = d * (K - 1) - p
    # TODO(synk): p_eff < 0 (pad > dilation*(K-1)) would require output cropping.
    assert p_eff >= 0

    x = x_nchw.astype(jnp.bfloat16)               # bf16 glue: halves the XLA-side traffic

    # zero-insertion upsample by stride (transposed conv -> stride-1 conv), then pad
    Hu, Wu = (H - 1) * s + 1, (W - 1) * s + 1
    x_up = jnp.zeros((N, Cin, Hu, Wu), jnp.bfloat16).at[:, :, ::s, ::s].set(x)
    x_pad = jnp.pad(
        x_up, ((0, 0), (0, 0), (p_eff, p_eff + out_pad), (p_eff, p_eff + out_pad)))

    cols = [x_pad[:, :, kh * d:kh * d + Ho, kw * d:kw * d + Wo]
            for kh in range(K) for kw in range(K)]               # each (N, Cin, Ho, Wo)
    at = (jnp.stack(cols, axis=0)                                 # (K*K, N, Cin, Ho, Wo)
          .transpose(0, 2, 1, 3, 4)                               # (K*K, Cin, N, Ho, Wo)
          .reshape(K * K * Cin, N * Ho * Wo))                     # A^T: (Kdim, M)

    # weight (Cin, Cout, K, K) -> spatial flip -> W^T[cout, (kh*K+kw)*Cin + cin]
    w_flip = jnp.flip(weight, axis=(2, 3))
    wt = jnp.transpose(w_flip, (1, 2, 3, 0)).reshape(Cout, K * K * Cin).astype(jnp.bfloat16)
    return at, wt, (N, Ho, Wo, Cout)


@partial(jax.jit, static_argnames=("stride", "pad", "dilation"))
def deconvbn_forward(x_nchw, weight, gamma, beta, *, stride, pad, dilation):
    """ConvTranspose2dSame (out = in*stride) + BatchNorm2d (training batch stats), fused."""
    at, wt, (N, Ho, Wo, Cout) = _im2col_transposed_conv(
        x_nchw, weight, stride=stride, pad=pad, dilation=dilation)
    Kdim, M = at.shape

    Kpad = _round_up(Kdim, 16)       # bf16 sublane multiple on the contraction axis
    Cpad = _round_up(Cout, 8)        # f32 sublane multiple: small Cout stays on sublanes
    Mpad = _round_up(M, 128)         # lane-dense output / store axis

    at_p = jnp.pad(at, ((0, Kpad - Kdim), (0, Mpad - M)))
    wt_p = jnp.pad(wt, ((0, Cpad - Cout), (0, Kpad - Kdim)))
    g_p = jnp.pad(gamma.astype(jnp.float32), (0, Cpad - Cout)).reshape(Cpad, 1)
    b_p = jnp.pad(beta.astype(jnp.float32), (0, Cpad - Cout)).reshape(Cpad, 1)

    # Whole problem as one grid step, everything resident in VMEM (~0.6 MiB at these shapes).
    fused_bytes = 2 * (at_p.size * 2 + wt_p.size * 2 + Cpad * Mpad * 4) + 8 * Cpad * 512
    # TODO(synk): two-pass bf16-intermediate fallback (M-tiled, stats pass sharded across v7x's
    #             two cores) for activations too large to keep resident in VMEM.
    assert fused_bytes <= 24 * 1024 * 1024, "activation too large for the fused VMEM path"

    kernel = partial(_fused_deconv_bn_kernel, inv_m=1.0 / M, eps=BN_EPS)
    ot = pl.pallas_call(
        kernel,
        grid=(1,),
        in_specs=[
            pl.BlockSpec((Cpad, Kpad), lambda i: (0, 0)),   # W^T
            pl.BlockSpec((Kpad, Mpad), lambda i: (0, 0)),   # A^T
            pl.BlockSpec((Cpad, 1), lambda i: (0, 0)),      # gamma
            pl.BlockSpec((Cpad, 1), lambda i: (0, 0)),      # beta
        ],
        out_specs=pl.BlockSpec((Cpad, Mpad), lambda i: (0, 0)),
        out_shape=jax.ShapeDtypeStruct((Cpad, Mpad), jnp.float32),
        compiler_params=pltpu.CompilerParams(
            dimension_semantics=("arbitrary",),
            vmem_limit_bytes=32 * 1024 * 1024,              # safe scoped ceiling on v5e/v6e/v7x
        ),
    )(wt_p, at_p, g_p, b_p)

    out = ot[:Cout, :M].reshape(Cout, N, Ho, Wo)
    return jnp.transpose(out, (1, 0, 2, 3))                  # -> NCHW


def _reference_forward(x_nchw, weight, gamma, beta, *, stride, pad, dilation):
    """Independent f32 reference: lax transposed conv (lhs dilation) + batch-stats BN."""
    N, Cin, H, W = x_nchw.shape
    _, Cout, K, _ = weight.shape
    s, p, d = stride, pad, dilation
    Ho = H * s
    out_pad = Ho - ((H - 1) * s - 2 * p + d * (K - 1) + 1)
    p_eff = d * (K - 1) - p
    rhs = jnp.transpose(jnp.flip(weight, axis=(2, 3)), (1, 0, 2, 3)).astype(jnp.float32)
    y = jax.lax.conv_general_dilated(
        x_nchw.astype(jnp.float32), rhs,
        window_strides=(1, 1),
        padding=((p_eff, p_eff + out_pad), (p_eff, p_eff + out_pad)),
        lhs_dilation=(s, s), rhs_dilation=(d, d),
        dimension_numbers=("NCHW", "OIHW", "NCHW"))
    mean = jnp.mean(y, axis=(0, 2, 3), keepdims=True)
    var = jnp.mean((y - mean) ** 2, axis=(0, 2, 3), keepdims=True)
    yn = (y - mean) * jax.lax.rsqrt(var + BN_EPS)
    return yn * gamma.reshape(1, Cout, 1, 1) + beta.reshape(1, Cout, 1, 1)


if __name__ == "__main__":
    # deconvbn(in=4, out=8, k=3, stride=2, pad=1, dil=1) at small NCHW shapes.
    N, Cin, H, W = 2, 4, 16, 16
    Cout, K, stride, pad, dilation = 8, 3, 2, 1, 1

    key = jax.random.PRNGKey(0)
    kx, kwt = jax.random.split(key)

    x = jax.random.normal(kx, (N, Cin, H, W), jnp.float32)

    # deterministic init mimicking the module: weight ~ N(0, sqrt(2/(k*k*out)))
    std = math.sqrt(2.0 / (K * K * Cout))
    weight = std * jax.random.normal(kwt, (Cin, Cout, K, K), jnp.float32)
    gamma = jnp.ones((Cout,), jnp.float32)      # BN weight filled with 1
    beta = jnp.zeros((Cout,), jnp.float32)      # BN bias zeroed

    y = deconvbn_forward(x, weight, gamma, beta,
                         stride=stride, pad=pad, dilation=dilation)
    jax.block_until_ready(y)
    assert y.shape == (N, Cout, H * stride, W * stride)

    y_ref = _reference_forward(x, weight, gamma, beta,
                               stride=stride, pad=pad, dilation=dilation)
    err = float(jnp.max(jnp.abs(y - y_ref)))
    assert err < 0.15, f"max abs error vs f32 reference too large: {err}"
    print("KERNEL_OK")
</pallas_src>

<mosaic_0001>
module attributes {stable_mosaic.version = 11 : i64} {
  func.func @_fused_deconv_bn_kernel(%arg0: i32, %arg1: memref<8x48xbf16, #tpu.memory_space<vmem>>, %arg2: memref<48x2048xbf16, #tpu.memory_space<vmem>>, %arg3: memref<8x1xf32, #tpu.memory_space<vmem>>, %arg4: memref<8x1xf32, #tpu.memory_space<vmem>>, %arg5: memref<8x2048xf32, #tpu.memory_space<vmem>>) attributes {dimension_semantics = [#tpu.dimension_semantics<arbitrary>], iteration_bounds = array<i64: 1>, scalar_prefetch = 0 : i64, scratch_operands = 0 : i64, tpu.core_type = #tpu.core_type<tc>, window_params = [{pipeline_mode = #tpu.pipeline_mode<synchronous>, transform_indices = @transform_0, window_bounds = array<i64: 8, 48>}, {pipeline_mode = #tpu.pipeline_mode<synchronous>, transform_indices = @transform_1, window_bounds = array<i64: 48, 2048>}, {pipeline_mode = #tpu.pipeline_mode<synchronous>, transform_indices = @transform_2, window_bounds = array<i64: 8, 1>}, {pipeline_mode = #tpu.pipeline_mode<synchronous>, transform_indices = @transform_3, window_bounds = array<i64: 8, 1>}, {pipeline_mode = #tpu.pipeline_mode<synchronous>, transform_indices = @transform_4, window_bounds = array<i64: 8, 2048>}]} {
    %c0 = arith.constant 0 : index
    %c0_0 = arith.constant 0 : index
    %0 = vector.load %arg1[%c0, %c0_0] : memref<8x48xbf16, #tpu.memory_space<vmem>>, vector<8x48xbf16>
    %c0_1 = arith.constant 0 : index
    %c0_2 = arith.constant 0 : index
    %1 = vector.load %arg2[%c0_1, %c0_2] : memref<48x2048xbf16, #tpu.memory_space<vmem>>, vector<48x2048xbf16>
    %cst = arith.constant dense<0.000000e+00> : vector<8x2048xf32>
    %2 = tpu.matmul %0, %1, %cst {dimension_numbers = #tpu.dot_dimension_numbers<[1], [0], [0], [1], [0, 0, 1, 1], [], []>} : vector<8x48xbf16>, vector<48x2048xbf16>, vector<8x2048xf32> -> vector<8x2048xf32>
    %cst_3 = arith.constant dense<0.000000e+00> : vector<8xf32>
    %3 = vector.multi_reduction <add>, %2, %cst_3 [1] : vector<8x2048xf32> to vector<8xf32>
    %4 = vector.shape_cast %3 : vector<8xf32> to vector<8x1xf32>
    %5 = arith.mulf %2, %2 : vector<8x2048xf32>
    %cst_4 = arith.constant dense<0.000000e+00> : vector<8xf32>
    %6 = vector.multi_reduction <add>, %5, %cst_4 [1] : vector<8x2048xf32> to vector<8xf32>
    %7 = vector.shape_cast %6 : vector<8xf32> to vector<8x1xf32>
    %cst_5 = arith.constant 4.8828125E-4 : f32
    %8 = vector.broadcast %cst_5 : f32 to vector<8x1xf32>
    %9 = arith.mulf %4, %8 : vector<8x1xf32>
    %cst_6 = arith.constant 4.8828125E-4 : f32
    %10 = vector.broadcast %cst_6 : f32 to vector<8x1xf32>
    %11 = arith.mulf %7, %10 : vector<8x1xf32>
    %12 = arith.mulf %9, %9 : vector<8x1xf32>
    %13 = arith.subf %11, %12 : vector<8x1xf32>
    %cst_7 = arith.constant 0.000000e+00 : f32
    %14 = vector.broadcast %cst_7 : f32 to vector<8x1xf32>
    %15 = arith.maximumf %13, %14 : vector<8x1xf32>
    %c0_8 = arith.constant 0 : index
    %c0_9 = arith.constant 0 : index
    %16 = vector.load %arg3[%c0_8, %c0_9] : memref<8x1xf32, #tpu.memory_space<vmem>>, vector<8x1xf32>
    %cst_10 = arith.constant 9.99999974E-6 : f32
    %17 = vector.broadcast %cst_10 : f32 to vector<8x1xf32>
    %18 = arith.addf %15, %17 : vector<8x1xf32>
    %19 = math.rsqrt %18 : vector<8x1xf32>
    %20 = arith.mulf %16, %19 : vector<8x1xf32>
    %c0_11 = arith.constant 0 : index
    %c0_12 = arith.constant 0 : index
    %21 = vector.load %arg4[%c0_11, %c0_12] : memref<8x1xf32, #tpu.memory_space<vmem>>, vector<8x1xf32>
    %22 = arith.mulf %9, %20 : vector<8x1xf32>
    %23 = arith.subf %21, %22 : vector<8x1xf32>
    %24 = vector.broadcast %20 : vector<8x1xf32> to vector<8x2048xf32>
    %25 = arith.mulf %2, %24 : vector<8x2048xf32>
    %26 = vector.broadcast %23 : vector<8x1xf32> to vector<8x2048xf32>
    %27 = arith.addf %25, %26 : vector<8x2048xf32>
    %c0_13 = arith.constant 0 : index
    %c0_14 = arith.constant 0 : index
    %28 = vector.load %arg5[%c0_13, %c0_14] : memref<8x2048xf32, #tpu.memory_space<vmem>>, vector<8x2048xf32>
    tpu.vector_store %arg5[%c0_13, %c0_14], %27 {strides = array<i32>} : memref<8x2048xf32, #tpu.memory_space<vmem>>, vector<8x2048xf32>,
    return
  }
  func.func @transform_0(%arg0: i32) -> (i32, i32) {
    %c0_i32 = arith.constant 0 : i32
    %c0_i32_0 = arith.constant 0 : i32
    %c0_i32_1 = arith.constant 0 : i32
    return %c0_i32, %c0_i32_0 : i32, i32
  }
  func.func @transform_1(%arg0: i32) -> (i32, i32) {
    %c0_i32 = arith.constant 0 : i32
    %c0_i32_0 = arith.constant 0 : i32
    %c0_i32_1 = arith.constant 0 : i32
    return %c0_i32, %c0_i32_0 : i32, i32
  }
  func.func @transform_2(%arg0: i32) -> (i32, i32) {
    %c0_i32 = arith.constant 0 : i32
    %c0_i32_0 = arith.constant 0 : i32
    %c0_i32_1 = arith.constant 0 : i32
    return %c0_i32, %c0_i32_0 : i32, i32
  }
  func.func @transform_3(%arg0: i32) -> (i32, i32) {
    %c0_i32 = arith.constant 0 : i32
    %c0_i32_0 = arith.constant 0 : i32
    %c0_i32_1 = arith.constant 0 : i32
    return %c0_i32, %c0_i32_0 : i32, i32
  }
  func.func @transform_4(%arg0: i32) -> (i32, i32) {
    %c0_i32 = arith.constant 0 : i32
    %c0_i32_0 = arith.constant 0 : i32
    %c0_i32_1 = arith.constant 0 : i32
    return %c0_i32, %c0_i32_0 : i32, i32
  }
}

</mosaic_0001>

<bundles_post_ra>
// kernel: deconvbn_forward.1
= control target key start
LH: loop header
LB: loop body
LE: loop exit
PB: predicated region body
PF: predicated region fallthrough
CT: control target
= control target key end

     0   :  { %v824_v3 = vmov 0   ;;  %vm307_vm0 = vcmask 392192   ;;  %s1151_s1 = inlined_call_operand.vmem [shape: bf16[48,2048], index: 1, kind: input, shape index: {}]   ;;  %s1152_s0 = inlined_call_operand.vmem [shape: bf16[8,48], index: 0, kind: input, shape index: {}]   ;;  %s1153_s2 = inlined_call_operand.vmem [shape: f32[8,1], index: 2, kind: input, shape index: {}]   ;;  %s1154_s3 = inlined_call_operand.vmem [shape: f32[8,1], index: 3, kind: input, shape index: {}]   ;;  %s1155_s4 = inlined_call_operand.vmem [shape: f32[8,2048], index: 4, kind: output, shape index: {}]  }
   0x1   :  { %v51_v0 = vld [vmem:[%s1151_s1 + $0x100] sm:$0xff]  ;;  %v52_v2 = vld [vmem:[%s1151_s1 + $0x108] sm:$0xff]  ;;  %343 = vmatprep.mubr.bf16.mxu0 %v824_v3  ;;  %384 = vmatprep.mubr.bf16.mxu1 %v824_v3  ;;  %v53_v23 = vld [vmem:[%s1151_s1 + $0x110] sm:$0xff] }
   0x2   :  { %v59_v1 = vld [vmem:[%s1151_s1 + $0x140] sm:$0xff]  ;;  %v60_v5 = vld [vmem:[%s1151_s1 + $0x148] sm:$0xff]  ;;  %820 = vset.pattern.permute.xlu1 %v824_v3  ;;  %821 = vset.pattern.permute.xlu0 %v824_v3  ;;  %v61_v24 = vld [vmem:[%s1151_s1 + $0x150] sm:$0xff] }
   0x3   :  { %v796_v4 = vcombine.high %v51_v0, %v59_v1  ;;  %v795_v6 = vcombine.low %v51_v0, %v59_v1  ;;  %v35_v7 = vld [vmem:[%s1151_s1 + $0x80] sm:$0xff]  ;;  %v798_v9 = vcombine.high %v52_v2, %v60_v5  ;;  %v797_v10 = vcombine.low %v52_v2, %v60_v5  ;;  %v36_v12 = vld [vmem:[%s1151_s1 + $0x88] sm:$0xff]  ;;  %v54_v25 = vld [vmem:[%s1151_s1 + $0x118] sm:$0xff] }
   0x4   :  { %v43_v8 = vld [vmem:[%s1151_s1 + $0xc0] sm:$0xff]  ;;  %v44_v13 = vld [vmem:[%s1151_s1 + $0xc8] sm:$0xff]  ;;  %v62_v26 = vld [vmem:[%s1151_s1 + $0x158] sm:$0xff]  ;;  %v800_v29 = vcombine.high %v53_v23, %v61_v24  ;;  %v799_v36 = vcombine.low %v53_v23, %v61_v24 }
   0x5   :  { %v780_v11 = vcombine.high %v35_v7, %v43_v8  ;;  %v19_v14 = vld [vmem:[%s1151_s1] sm:$0xff]  ;;  %321 = vmatprep.subr.bf16.mxu0 %v796_v4  ;;  %v782_v15 = vcombine.high %v36_v12, %v44_v13  ;;  %v20_v17 = vld [vmem:[%s1151_s1 + $0x8] sm:$0xff]  ;;  %362 = vmatprep.subr.bf16.mxu1 %v798_v9  ;;  %v779_v19 = vcombine.low %v35_v7, %v43_v8  ;;  %v37_v31 = vld [vmem:[%s1151_s1 + $0x90] sm:$0xff] }
   0x6   :  { %v27_v16 = vld [vmem:[%s1151_s1 + $0x40] sm:$0xff]  ;;  %v28_v18 = vld [vmem:[%s1151_s1 + $0x48] sm:$0xff]  ;;  %322 = vmatpush1.bf16.msra.mxu0 %v795_v6  ;;  %363 = vmatpush1.bf16.msra.mxu1 %v797_v10  ;;  %v781_v20 = vcombine.low %v36_v12, %v44_v13  ;;  %v802_v30 = vcombine.high %v54_v25, %v62_v26  ;;  %v45_v32 = vld [vmem:[%s1151_s1 + $0xd0] sm:$0xff]  ;;  %v801_v37 = vcombine.low %v54_v25, %v62_v26 }
   0x7   :  { %323 = vmatprep.subr.bf16.mxu0 %v780_v11  ;;  %v764_v21 = vcombine.high %v19_v14, %v27_v16  ;;  %364 = vmatprep.subr.bf16.mxu1 %v782_v15  ;;  %v766_v22 = vcombine.high %v20_v17, %v28_v18  ;;  %v763_v27 = vcombine.low %v19_v14, %v27_v16  ;;  %v38_v33 = vld [vmem:[%s1151_s1 + $0x98] sm:$0xff]  ;;  %v917_v35 = vld [vmem:[%s1152_s0] sm:$0xf]  ;;  %v21_v40 = vld [vmem:[%s1151_s1 + $0x10] sm:$0xff] }
   0x8   :  { %v765_v28 = vcombine.low %v20_v17, %v28_v18  ;;  %v46_v34 = vld [vmem:[%s1151_s1 + $0xd8] sm:$0xff]  ;;  %v784_v38 = vcombine.high %v37_v31, %v45_v32  ;;  %v29_v41 = vld [vmem:[%s1151_s1 + $0x50] sm:$0xff]  ;;  %v783_v44 = vcombine.low %v37_v31, %v45_v32  ;;  %v55_v48 = vld [vmem:[%s1151_s1 + $0x120] sm:$0xff] }
   0x9   :  { %v786_v39 = vcombine.high %v38_v33, %v46_v34  ;;  %v22_v42 = vld [vmem:[%s1151_s1 + $0x18] sm:$0xff]  ;;  %v785_v45 = vcombine.low %v38_v33, %v46_v34  ;;  %v768_v46 = vcombine.high %v21_v40, %v29_v41  ;;  %v63_v49 = vld [vmem:[%s1151_s1 + $0x160] sm:$0xff]  ;;  %v56_v50 = vld [vmem:[%s1151_s1 + $0x128] sm:$0xff]  ;;  %v767_v52 = vcombine.low %v21_v40, %v29_v41 }
   0xa   :  { %324 = vmatpush1.bf16.msra.mxu0 %v779_v19  ;;  %365 = vmatpush1.bf16.msra.mxu1 %v781_v20  ;;  %v30_v43 = vld [vmem:[%s1151_s1 + $0x58] sm:$0xff]  ;;  %v64_v51 = vld [vmem:[%s1151_s1 + $0x168] sm:$0xff]  ;;  %v804_v54 = vcombine.high %v55_v48, %v63_v49  ;;  %v39_v56 = vld [vmem:[%s1151_s1 + $0xa0] sm:$0xff]  ;;  %v803_v60 = vcombine.low %v55_v48, %v63_v49 }
   0xb   :  { %325 = vmatprep.subr.bf16.mxu0 %v764_v21  ;;  %366 = vmatprep.subr.bf16.mxu1 %v766_v22  ;;  %v770_v47 = vcombine.high %v22_v42, %v30_v43  ;;  %v769_v53 = vcombine.low %v22_v42, %v30_v43  ;;  %v806_v55 = vcombine.high %v56_v50, %v64_v51  ;;  %v47_v57 = vld [vmem:[%s1151_s1 + $0xe0] sm:$0xff]  ;;  %v40_v58 = vld [vmem:[%s1151_s1 + $0xa8] sm:$0xff]  ;;  %v57_v9 = vld [vmem:[%s1151_s1 + $0x130] sm:$0xff] }
   0xc   :  { %v48_v59 = vld [vmem:[%s1151_s1 + $0xe8] sm:$0xff]  ;;  %v805_v61 = vcombine.low %v56_v50, %v64_v51  ;;  %v788_v62 = vcombine.high %v39_v56, %v47_v57  ;;  %v23_v0 = vld [vmem:[%s1151_s1 + $0x20] sm:$0xff]  ;;  %v787_v5 = vcombine.low %v39_v56, %v47_v57  ;;  %v65_v10 = vld [vmem:[%s1151_s1 + $0x170] sm:$0xff] }
   0xd   :  { %v790_v63 = vcombine.high %v40_v58, %v48_v59  ;;  %v31_v1 = vld [vmem:[%s1151_s1 + $0x60] sm:$0xff]  ;;  %v24_v2 = vld [vmem:[%s1151_s1 + $0x28] sm:$0xff]  ;;  %v789_v6 = vcombine.low %v40_v58, %v48_v59  ;;  %v58_v11 = vld [vmem:[%s1151_s1 + $0x138] sm:$0xff]  ;;  %v808_v15 = vcombine.high %v57_v9, %v65_v10  ;;  %v807_v21 = vcombine.low %v57_v9, %v65_v10 }
   0xe   :  { %326 = vmatpush1.bf16.msra.mxu0 %v763_v27  ;;  %367 = vmatpush1.bf16.msra.mxu1 %v765_v28  ;;  %v32_v4 = vld [vmem:[%s1151_s1 + $0x68] sm:$0xff]  ;;  %v772_v7 = vcombine.high %v23_v0, %v31_v1  ;;  %v66_v12 = vld [vmem:[%s1151_s1 + $0x178] sm:$0xff]  ;;  %v771_v13 = vcombine.low %v23_v0, %v31_v1  ;;  %v41_v17 = vld [vmem:[%s1151_s1 + $0xb0] sm:$0xff] }
   0xf   :  { %403 = vmatprep.subr.bf16.mxu0 %v800_v29  ;;  %444 = vmatprep.subr.bf16.mxu1 %v802_v30  ;;  %v774_v8 = vcombine.high %v24_v2, %v32_v4  ;;  %v773_v14 = vcombine.low %v24_v2, %v32_v4  ;;  %v810_v16 = vcombine.high %v58_v11, %v66_v12  ;;  %v49_v18 = vld [vmem:[%s1151_s1 + $0xf0] sm:$0xff]  ;;  %v42_v19 = vld [vmem:[%s1151_s1 + $0xb8] sm:$0xff] }
  0x10   :  { %v50_v20 = vld [vmem:[%s1151_s1 + $0xf8] sm:$0xff]  ;;  %v809_v22 = vcombine.low %v58_v11, %v66_v12  ;;  %v792_v23 = vcombine.high %v41_v17, %v49_v18  ;;  %v25_v25 = vld [vmem:[%s1151_s1 + $0x30] sm:$0xff]  ;;  %v791_v29 = vcombine.low %v41_v17, %v49_v18 }
  0x11   :  { %811 = vmatmul.mubr.msk.bf16.vlgmr.msra.gmra.mxu0 %vm307_vm0, %v917_v35  ;;  %812 = vmatmul.mubr.msk.bf16.vlgmr.msra.gmra.mxu1 %vm307_vm0, %v917_v35  ;;  %v794_v24 = vcombine.high %v42_v19, %v50_v20  ;;  %v33_v26 = vld [vmem:[%s1151_s1 + $0x70] sm:$0xff]  ;;  %v26_v27 = vld [vmem:[%s1151_s1 + $0x38] sm:$0xff]  ;;  %v793_v30 = vcombine.low %v42_v19, %v50_v20 }
  0x12   :  { %404 = vmatpush1.bf16.msra.mxu0 %v799_v36  ;;  %445 = vmatpush1.bf16.msra.mxu1 %v801_v37  ;;  %v34_v28 = vld [vmem:[%s1151_s1 + $0x78] sm:$0xff]  ;;  %v776_v31 = vcombine.high %v25_v25, %v33_v26  ;;  %v775_v33 = vcombine.low %v25_v25, %v33_v26 }
  0x13   :  { %405 = vmatprep.subr.bf16.mxu0 %v784_v38  ;;  %446 = vmatprep.subr.bf16.mxu1 %v786_v39  ;;  %v778_v32 = vcombine.high %v26_v27, %v34_v28  ;;  %v777_v34 = vcombine.low %v26_v27, %v34_v28 }
  0x14   :  { %425 = vmatprep.mubr.bf16.mxu0 %v824_v3  ;;  %466 = vmatprep.mubr.bf16.mxu1 %v824_v3 }
  0x16   :  { %406 = vmatpush1.bf16.msra.mxu0 %v783_v44  ;;  %447 = vmatpush1.bf16.msra.mxu1 %v785_v45 }
  0x17   :  { %407 = vmatprep.subr.bf16.mxu0 %v768_v46  ;;  %448 = vmatprep.subr.bf16.mxu1 %v770_v47 }
  0x1a   :  { %408 = vmatpush1.bf16.msra.mxu0 %v767_v52  ;;  %449 = vmatpush1.bf16.msra.mxu1 %v769_v53 }
  0x1b   :  { %485 = vmatprep.subr.bf16.mxu0 %v804_v54  ;;  %526 = vmatprep.subr.bf16.mxu1 %v806_v55 }
  0x1d   :  { %813 = vmatmul.mubr.msk.bf16.vlgmr.msra.gmra.mxu0 %vm307_vm0, %v917_v35  ;;  %814 = vmatmul.mubr.msk.bf16.vlgmr.msra.gmra.mxu1 %vm307_vm0, %v917_v35 }
  0x1e   :  { %486 = vmatpush1.bf16.msra.mxu0 %v803_v60  ;;  %527 = vmatpush1.bf16.msra.mxu1 %v805_v61 }
  0x1f   :  { %487 = vmatprep.subr.bf16.mxu0 %v788_v62  ;;  %528 = vmatprep.subr.bf16.mxu1 %v790_v63 }
  0x20   :  { %507 = vmatprep.mubr.bf16.mxu0 %v824_v3  ;;  %548 = vmatprep.mubr.bf16.mxu1 %v824_v3 }
  0x22   :  { %488 = vmatpush1.bf16.msra.mxu0 %v787_v5  ;;  %529 = vmatpush1.bf16.msra.mxu1 %v789_v6 }
  0x23   :  { %489 = vmatprep.subr.bf16.mxu0 %v772_v7  ;;  %530 = vmatprep.subr.bf16.mxu1 %v774_v8 }
  0x26   :  { %490 = vmatpush1.bf16.msra.mxu0 %v771_v13  ;;  %531 = vmatpush1.bf16.msra.mxu1 %v773_v14 }
  0x27   :  { %567 = vmatprep.subr.bf16.mxu0 %v808_v15  ;;  %608 = vmatprep.subr.bf16.mxu1 %v810_v16 }
  0x29   :  { %815 = vmatmul.mubr.msk.bf16.vlgmr.msra.gmra.mxu0 %vm307_vm0, %v917_v35  ;;  %816 = vmatmul.mubr.msk.bf16.vlgmr.msra.gmra.mxu1 %vm307_vm0, %v917_v35 }
  0x2a   :  { %568 = vmatpush1.bf16.msra.mxu0 %v807_v21  ;;  %609 = vmatpush1.bf16.msra.mxu1 %v809_v22 }
  0x2b   :  { %569 = vmatprep.subr.bf16.mxu0 %v792_v23  ;;  %610 = vmatprep.subr.bf16.mxu1 %v794_v24 }
  0x2c   :  { %589 = vmatprep.mubr.bf16.mxu0 %v824_v3  ;;  %630 = vmatprep.mubr.bf16.mxu1 %v824_v3 }
  0x2e   :  { %570 = vmatpush1.bf16.msra.mxu0 %v791_v29  ;;  %611 = vmatpush1.bf16.msra.mxu1 %v793_v30 }
  0x2f   :  { %571 = vmatprep.subr.bf16.mxu0 %v776_v31  ;;  %612 = vmatprep.subr.bf16.mxu1 %v778_v32 }
  0x32   :  { %572 = vmatpush1.bf16.msra.mxu0 %v775_v33  ;;  %613 = vmatpush1.bf16.msra.mxu1 %v777_v34 }
  0x35   :  { %817 = vmatmul.mubr.msk.bf16.vlgmr.msra.gmra.mxu0 %vm307_vm0, %v917_v35  ;;  %818 = vmatmul.mubr.msk.bf16.vlgmr.msra.gmra.mxu1 %vm307_vm0, %v917_v35 }
  0xd1   :  { %v1025_v36 = vpop.f32.mrf.mxu0  ;;  %v1029_v3 = vpop.f32.mrf.mxu1 }
  0xd2   :  { %v656_v37 = vmul.f32 %v1025_v36, %v1025_v36  ;;  %v658_v35 = vmul.f32 %v1029_v3, %v1029_v3 }
  0xd3   :  { %v1031_v38 = vpop.f32.mrf.mxu0  ;;  %v1037_v41 = vpop.f32.mrf.mxu1 }
  0xd4   :  { %v639_v39 = vadd.f32 %v1031_v38, %v1025_v36  ;;  %v657_v40 = vmul.f32 %v1031_v38, %v1031_v38  ;;  %v659_v48 = vmul.f32 %v1037_v41, %v1037_v41 }
  0xd5   :  { %v349_v42 = vpop.f32.mrf.mxu0  ;;  %v390_v44 = vpop.f32.mrf.mxu1 }
  0xd6   :  { %v672_v43 = vadd.f32 %v657_v40, %v656_v37  ;;  %v640_v46 = vadd.f32 %v639_v39, %v1029_v3 }
  0xd7   :  { %v350_v45 = vpop.f32.mrf.mxu0  ;;  %v391_v47 = vpop.f32.mrf.mxu1 }
  0xd8   :  { %v673_v49 = vadd.f32 %v672_v43, %v658_v35  ;;  %v641_v50 = vadd.f32 %v640_v46, %v1037_v41 }
  0xda   :  { %v674_v52 = vadd.f32 %v673_v49, %v659_v48 }
  0xdd   :  { %v1045_v51 = vpop.f32.mrf.mxu0  ;;  %v1050_v55 = vpop.f32.mrf.mxu1 }
  0xde   :  { %v642_v53 = vadd.f32 %v641_v50, %v1045_v51  ;;  %v660_v54 = vmul.f32 %v1045_v51, %v1045_v51  ;;  %v662_v62 = vmul.f32 %v1050_v55, %v1050_v55 }
  0xdf   :  { %v1052_v56 = vpop.f32.mrf.mxu0  ;;  %v1057_v60 = vpop.f32.mrf.mxu1 }
  0xe0   :  { %v675_v57 = vadd.f32 %v674_v52, %v660_v54  ;;  %v643_v58 = vadd.f32 %v642_v53, %v1052_v56  ;;  %v661_v59 = vmul.f32 %v1052_v56, %v1052_v56  ;;  %v663_v5 = vmul.f32 %v1057_v60, %v1057_v60 }
  0xe1   :  { %v431_v61 = vpop.f32.mrf.mxu0  ;;  %v472_v0 = vpop.f32.mrf.mxu1 }
  0xe2   :  { %v676_v63 = vadd.f32 %v675_v57, %v661_v59  ;;  %v644_v2 = vadd.f32 %v643_v58, %v1050_v55  ;;  %v694_v0 = vld [vmem:[%s1153_s2] sm:$0xff] }
  0xe3   :  { %v432_v1 = vpop.f32.mrf.mxu0  ;;  %v473_v4 = vpop.f32.mrf.mxu1 }
  0xe4   :  { %v677_v6 = vadd.f32 %v676_v63, %v662_v62  ;;  %v645_v7 = vadd.f32 %v644_v2, %v1057_v60  ;;  %v698_v4 = vld [vmem:[%s1154_s3] sm:$0xff] }
  0xe6   :  { %v678_v9 = vadd.f32 %v677_v6, %v663_v5 }
  0xe9   :  { %v1065_v8 = vpop.f32.mrf.mxu0  ;;  %v1070_v12 = vpop.f32.mrf.mxu1 }
  0xea   :  { %v646_v10 = vadd.f32 %v645_v7, %v1065_v8  ;;  %v664_v11 = vmul.f32 %v1065_v8, %v1065_v8  ;;  %v666_v19 = vmul.f32 %v1070_v12, %v1070_v12 }
  0xeb   :  { %v1072_v13 = vpop.f32.mrf.mxu0  ;;  %v1077_v17 = vpop.f32.mrf.mxu1 }
  0xec   :  { %v679_v14 = vadd.f32 %v678_v9, %v664_v11  ;;  %v647_v15 = vadd.f32 %v646_v10, %v1072_v13  ;;  %v665_v16 = vmul.f32 %v1072_v13, %v1072_v13  ;;  %v667_v25 = vmul.f32 %v1077_v17, %v1077_v17 }
  0xed   :  { %v513_v18 = vpop.f32.mrf.mxu0  ;;  %v554_v21 = vpop.f32.mrf.mxu1 }
  0xee   :  { %v680_v20 = vadd.f32 %v679_v14, %v665_v16  ;;  %v648_v23 = vadd.f32 %v647_v15, %v1070_v12 }
  0xef   :  { %v514_v22 = vpop.f32.mrf.mxu0  ;;  %v555_v24 = vpop.f32.mrf.mxu1 }
  0xf0   :  { %v681_v26 = vadd.f32 %v680_v20, %v666_v19  ;;  %v649_v27 = vadd.f32 %v648_v23, %v1077_v17 }
  0xf2   :  { %v682_v29 = vadd.f32 %v681_v26, %v667_v25 }
  0xf5   :  { %v591_v28 = vpop.f32.mrf.mxu0  ;;  %v632_v32 = vpop.f32.mrf.mxu1 }
  0xf6   :  { %v650_v30 = vadd.f32 %v649_v27, %v591_v28  ;;  %v668_v31 = vmul.f32 %v591_v28, %v591_v28  ;;  %v670_v37 = vmul.f32 %v632_v32, %v632_v32 }
  0xf7   :  { %v593_v33 = vpop.f32.mrf.mxu0  ;;  %v634_v42 = vpop.f32.mrf.mxu1 }
  0xf8   :  { %v683_v34 = vadd.f32 %v682_v29, %v668_v31  ;;  %v651_v39 = vadd.f32 %v650_v30, %v593_v33  ;;  %v669_v40 = vmul.f32 %v593_v33, %v593_v33  ;;  %v671_v50 = vmul.f32 %v634_v42, %v634_v42 }
  0xf9   :  { %v595_v35 = vpop.f32.mrf.mxu0  ;;  %v636_v43 = vpop.f32.mrf.mxu1 }
  0xfa   :  { %v652_v44 = vadd.f32 %v651_v39, %v632_v32  ;;  %v684_v45 = vadd.f32 %v683_v34, %v669_v40 }
  0xfb   :  { %v596_v46 = vpop.f32.mrf.mxu0  ;;  %v637_v47 = vpop.f32.mrf.mxu1 }
  0xfc   :  { %v653_v48 = vadd.f32 %v652_v44, %v634_v42  ;;  %v685_v49 = vadd.f32 %v684_v45, %v670_v37 }
  0xfe   :  { %654 = vadd.xlane.f32.xlu0 %v653_v48  ;;  %v686_v52 = vadd.f32 %v685_v49, %v671_v50 }
 0x102   :  { %687 = vadd.xlane.f32.xlu0 %v686_v52 }
 0x187   :  { %v655_v53 = vpop.xlane.xlu0 %654 }
 0x188   :  { %v689_v54 = vmul.f32 0.00048828125, %v655_v53 }
 0x18a   :  { %v691_v58 = vmul.f32 %v689_v54, %v689_v54 }
 0x18b   :  { %v688_v57 = vpop.xlane.xlu0 %687 }
 0x18c   :  { %v690_v59 = vmul.f32 0.00048828125, %v688_v57 }
 0x18e   :  { %v692_v61 = vsub.f32 %v690_v59, %v691_v58 }
 0x190   :  { %v693_v62 = vmax.f32 %v692_v61, 0.0 }
 0x192   :  { %v695_v63 = vadd.f32 1e-05, %v693_v62 }
 0x194   :  { %822 = vrsqrt.f32 %v695_v63 }
 0x1a1   :  { %v823_v1 = vpop.eup %822 }
 0x1a2   :  { %v697_v2 = vmul.f32 %v823_v1, %v694_v0 }
 0x1a4   :  { %703 = vperm.xlu1 %820, %v697_v2   ;;  %v699_v5 = vmul.f32 %v697_v2, %v689_v54 }
 0x1a6   :  { %v700_v6 = vsub.f32 %v698_v4, %v699_v5 }
 0x1a8   :  { %724 = vperm.xlu1 %820, %v700_v6  }
 0x21f   :  { %v704_v7 = vpop.permute.xlu1 %703 }
 0x220   :  { %v706_v9 = vmul.f32 %v704_v7, %v1025_v36  ;;  %v707_v10 = vmul.f32 %v704_v7, %v1031_v38  ;;  %v708_v11 = vmul.f32 %v704_v7, %v1029_v3  ;;  %v709_v14 = vmul.f32 %v704_v7, %v1037_v41 }
 0x221   :  { %v710_v15 = vmul.f32 %v704_v7, %v1045_v51  ;;  %v711_v16 = vmul.f32 %v704_v7, %v1052_v56  ;;  %v712_v18 = vmul.f32 %v704_v7, %v1050_v55  ;;  %v713_v19 = vmul.f32 %v704_v7, %v1057_v60 }
 0x222   :  { %v714_v20 = vmul.f32 %v704_v7, %v1065_v8  ;;  %v715_v21 = vmul.f32 %v704_v7, %v1072_v13  ;;  %v716_v36 = vmul.f32 %v704_v7, %v1070_v12  ;;  %v717_v38 = vmul.f32 %v704_v7, %v1077_v17 }
 0x223   :  { %v718_v22 = vmul.f32 %v704_v7, %v591_v28  ;;  %v719_v3 = vmul.f32 %v704_v7, %v593_v33  ;;  %v720_v23 = vmul.f32 %v704_v7, %v632_v32  ;;  %v721_v41 = vmul.f32 %v704_v7, %v634_v42  ;;  %v725_v24 = vpop.permute.xlu1 %724 }
 0x224   :  { %v727_v51 = vadd.f32 %v725_v24, %v706_v9  ;;  %v728_v25 = vadd.f32 %v725_v24, %v707_v10  ;;  %v729_v56 = vadd.f32 %v725_v24, %v708_v11  ;;  %v730_v26 = vadd.f32 %v725_v24, %v709_v14 }
 0x225   :  { %v731_v55 = vadd.f32 %v725_v24, %v710_v15  ;;  %v732_v27 = vadd.f32 %v725_v24, %v711_v16  ;;  %v733_v60 = vadd.f32 %v725_v24, %v712_v18  ;;  %v734_v29 = vadd.f32 %v725_v24, %v713_v19 }
 0x226   :  { %v735_v8 = vadd.f32 %v725_v24, %v714_v20  ;;  %v736_v30 = vadd.f32 %v725_v24, %v715_v21  ;;  %v737_v13 = vadd.f32 %v725_v24, %v716_v36  ;;  %v738_v31 = vadd.f32 %v725_v24, %v717_v38  ;;  %743 = vst [vmem:[%s1155_s4] sm:$0xff] %v727_v51 }
 0x227   :  { %744 = vst [vmem:[%s1155_s4 + $0x8] sm:$0xff] %v728_v25  ;;  %745 = vst [vmem:[%s1155_s4 + $0x10] sm:$0xff] %v729_v56  ;;  %v739_v12 = vadd.f32 %v725_v24, %v718_v22  ;;  %v740_v17 = vadd.f32 %v725_v24, %v719_v3  ;;  %v741_v28 = vadd.f32 %v725_v24, %v720_v23 }
 0x228   :  { %746 = vst [vmem:[%s1155_s4 + $0x18] sm:$0xff] %v730_v26  ;;  %v742_v32 = vadd.f32 %v725_v24, %v721_v41  ;;  %747 = vst [vmem:[%s1155_s4 + $0x20] sm:$0xff] %v731_v55 }
 0x229   :  { %748 = vst [vmem:[%s1155_s4 + $0x28] sm:$0xff] %v732_v27  ;;  %749 = vst [vmem:[%s1155_s4 + $0x30] sm:$0xff] %v733_v60 }
 0x22a   :  { %750 = vst [vmem:[%s1155_s4 + $0x38] sm:$0xff] %v734_v29  ;;  %751 = vst [vmem:[%s1155_s4 + $0x40] sm:$0xff] %v735_v8 }
 0x22b   :  { %752 = vst [vmem:[%s1155_s4 + $0x48] sm:$0xff] %v736_v30  ;;  %753 = vst [vmem:[%s1155_s4 + $0x50] sm:$0xff] %v737_v13 }
 0x22c   :  { %754 = vst [vmem:[%s1155_s4 + $0x58] sm:$0xff] %v738_v31  ;;  %755 = vst [vmem:[%s1155_s4 + $0x60] sm:$0xff] %v739_v12 }
 0x22d   :  { %756 = vst [vmem:[%s1155_s4 + $0x68] sm:$0xff] %v740_v17  ;;  %757 = vst [vmem:[%s1155_s4 + $0x70] sm:$0xff] %v741_v28 }
 0x22e   :  { %758 = vst [vmem:[%s1155_s4 + $0x78] sm:$0xff] %v742_v32 }

</bundles_post_ra>
